<compile_context>
chip_gen: v7x
topology: tpu7x:2x2x1
jax: 0.10.0
libtpu: 0.0.40
codegen_flags: <defaults>
</compile_context>

<pallas_src>
import math

import jax
import jax.numpy as jnp
from jax.experimental import pallas as pl
from jax.experimental.pallas import tpu as pltpu


def patch_embed_kernel(x_ref, w_ref, posb_ref, o_ref):
    # x_ref:    (1, TN, Kp)  bf16 patch rows for one (batch, N-tile)
    # w_ref:    (Kp, TE)     bf16 flattened conv weight (resident over n, b)
    # posb_ref: (TN, TE)     bf16 pos_embed rows 1..N + conv bias (resident over b)
    # o_ref:    (1, TN, TE)  output tile (aligned, lane-dense)
    acc = jnp.dot(x_ref[0, :, :], w_ref[...], preferred_element_type=jnp.float32)
    o_ref[0, :, :] = (acc + posb_ref[...].astype(jnp.float32)).astype(o_ref.dtype)


def _round_up(x, m):
    return (x + m - 1) // m * m


def _pick_row_tile(n):
    """Row (patch) tile: multiple of 16 (bf16 sublane packing), <= 256 (MXU M).

    Returns (TN, N_pad) with TN | N_pad and N_pad >= n."""
    n16 = _round_up(max(n, 16), 16)
    if n16 <= 256:
        return n16, n16
    t = 256
    while t >= 16:
        if n16 % t == 0:
            return t, n16
        t -= 16
    return 16, n16  # unreachable (16 | n16); kept for clarity


def _vmem_bytes(tn, te, kp, out_bytes):
    """Double-buffered VMEM working set of the kernel (bytes)."""
    return 2 * (kp * te * 2         # weight  (bf16)
                + tn * te * 2       # posb    (bf16)
                + tn * kp * 2       # x tile  (bf16)
                + tn * te * out_bytes)


def _pick_e_tile(ep, tn, kp, out_bytes, budget):
    """Largest 128-multiple divisor of ep whose working set fits `budget`.

    Prefers TE == ep (E grid axis collapses -> x is streamed exactly once)."""
    te = ep
    while te > 128:
        if ep % te == 0 and _vmem_bytes(tn, te, kp, out_bytes) <= budget:
            return te
        te -= 128
    return 128


_VMEM_BUDGET = 16 * 1024 * 1024   # working-set budget; << v7x's 64 MiB physical


def patch_embedding_3d(x, weight, bias, cls_token, pos_embed, patch_size,
                       out_dtype=None):
    """x: (B, C, H, W) NCHW like the PyTorch module. Returns (B, N+1, E).

    Pass out_dtype=jnp.bfloat16 when the downstream model runs in bf16 to halve
    the kernel's output HBM stream."""
    B, C, H, W = x.shape
    P = patch_size
    E = weight.shape[0]
    assert H % P == 0 and W % P == 0, "H/W must be divisible by patch_size"
    Gh, Gw = H // P, W // P
    N = Gh * Gw
    K = C * P * P
    out_dtype = x.dtype if out_dtype is None else out_dtype
    out_bytes = jnp.dtype(out_dtype).itemsize

    # --- glue: NCHW -> patch-major (B, N, K) in bf16; weight -> (K, E) bf16. --
    x_bf = x.astype(jnp.bfloat16)
    x_patches = (
        x_bf.reshape(B, C, Gh, P, Gw, P)
        .transpose(0, 2, 4, 1, 3, 5)        # (B, Gh, Gw, C, P, P)
        .reshape(B, N, K)
    )
    w_mat = weight.reshape(E, K).T.astype(jnp.bfloat16)                # (K, E)
    # conv bias folded into pos_embed rows 1..N; stored bf16, upcast in-kernel.
    posb = (pos_embed[0, 1:, :] + bias[None, :]).astype(jnp.bfloat16)  # (N, E)

    # --- pad to MXU / lane-friendly shapes (numerically exact; sliced off). ---
    Kp = _round_up(K, 128)
    Ep = _round_up(E, 128)
    TN, N_pad = _pick_row_tile(N)
    TE = _pick_e_tile(Ep, TN, Kp, out_bytes, _VMEM_BUDGET)

    if (N_pad, Kp) != (N, K):
        x_patches = jnp.pad(x_patches, ((0, 0), (0, N_pad - N), (0, Kp - K)))
    if (Kp, Ep) != (K, E):
        w_mat = jnp.pad(w_mat, ((0, Kp - K), (0, Ep - E)))
    if (N_pad, Ep) != (N, E):
        posb = jnp.pad(posb, ((0, N_pad - N), (0, Ep - E)))

    # Grid: E tiles outermost (normally extent 1), then N tiles, then B
    # innermost.  B innermost => posb block (n, e) is constant over the b sweep
    # (fetched once per N tile); weight block (0, e) is constant over the whole
    # (n, b) sweep (fetched once).
    grid = (Ep // TE, N_pad // TN, B)

    vmem_need = _vmem_bytes(TN, TE, Kp, out_bytes)
    vmem_limit = int(min(32 * 1024 * 1024, max(2 * vmem_need, 4 * 1024 * 1024)))

    patch_out = pl.pallas_call(
        patch_embed_kernel,
        out_shape=jax.ShapeDtypeStruct((B, N_pad, Ep), out_dtype),
        grid_spec=pltpu.PrefetchScalarGridSpec(
            num_scalar_prefetch=0,
            grid=grid,
            in_specs=[
                pl.BlockSpec((1, TN, Kp), lambda e, n, b: (b, n, 0)),
                pl.BlockSpec((Kp, TE), lambda e, n, b: (0, e)),    # resident (n, b)
                pl.BlockSpec((TN, TE), lambda e, n, b: (n, e)),    # resident over b
            ],
            out_specs=pl.BlockSpec((1, TN, TE), lambda e, n, b: (b, n, e)),
        ),
        compiler_params=pltpu.CompilerParams(
            # No reduction axis -> all parallel (megacore-shardable).
            dimension_semantics=("parallel", "parallel", "parallel"),
            # Let XLA fold the im2col transpose/pad into the x operand read.
            allow_input_fusion=[True, False, False],
            # Right-sized working set, NOT physical VMEM (v7x: 64 MiB/core).
            vmem_limit_bytes=vmem_limit,
        ),
    )(x_patches, w_mat, posb)

    if (N_pad, Ep) != (N, E):
        patch_out = patch_out[:, :N, :E]

    # cls row (+ pos_embed[0]) and the seq-dim concat stay in the wrapper so
    # every kernel store remains aligned and unmasked.
    cls_rows = jnp.broadcast_to(
        (cls_token + pos_embed[:, :1, :]).astype(out_dtype), (B, 1, E))
    return jnp.concatenate([cls_rows, patch_out], axis=1)


def make_params(key, in_chans, patch_size, embed_size):
    """Deterministic synthetic parameter init (shapes from __init__, depth=1)."""
    kw, kb = jax.random.split(key)
    fan_in = in_chans * patch_size * patch_size
    # kaiming_uniform(a=sqrt(5))-style bound for the conv weight
    bound_w = 1.0 / math.sqrt(fan_in)
    weight = jax.random.uniform(
        kw, (embed_size, in_chans, patch_size, patch_size),
        minval=-bound_w, maxval=bound_w, dtype=jnp.float32)
    # xavier-style bound for bias
    bound_b = math.sqrt(6.0 / (fan_in + embed_size))
    bias = jax.random.uniform(
        kb, (embed_size,), minval=-bound_b, maxval=bound_b, dtype=jnp.float32)
    return weight, bias


if __name__ == "__main__":
    # small shapes: B=2, C=4, H=W=16, patch=4 -> N=16 patches, embed=32
    B, C, H, W = 2, 4, 16, 16
    P = 4
    E = 32
    Gh, Gw = H // P, W // P
    N = Gh * Gw

    key = jax.random.PRNGKey(0)
    kx, kp, kc, kpos = jax.random.split(key, 4)

    x = jax.random.normal(kx, (B, C, H, W), dtype=jnp.float32)
    weight, bias = make_params(kp, C, P, E)
    # The module inits cls_token / pos_embed to zeros; use small random values
    # so the cls-row and pos-embed add paths are actually exercised.
    cls_token = 0.02 * jax.random.normal(kc, (1, 1, E), dtype=jnp.float32)
    pos_embed = 0.02 * jax.random.normal(kpos, (1, N + 1, E), dtype=jnp.float32)

    out = patch_embedding_3d(x, weight, bias, cls_token, pos_embed, P)
    out = jax.block_until_ready(out)
    assert out.shape == (B, N + 1, E), out.shape

    # pure-JAX reference mirroring the kernel's precision choices
    # (bf16 x/w MXU inputs, f32 accumulate, bf16-stored pos_embed+bias).
    x_patches_ref = (
        x.reshape(B, C, Gh, P, Gw, P)
        .transpose(0, 2, 4, 1, 3, 5)
        .reshape(B, N, C * P * P)
    )
    posb_ref = (pos_embed[0, 1:, :] + bias[None, :]).astype(jnp.bfloat16)
    ref_patches = jnp.dot(
        x_patches_ref.astype(jnp.bfloat16),
        weight.reshape(E, -1).T.astype(jnp.bfloat16),
        preferred_element_type=jnp.float32,
    ) + posb_ref.astype(jnp.float32)
    ref = jnp.concatenate(
        [jnp.broadcast_to(cls_token + pos_embed[:, :1, :], (B, 1, E)),
         ref_patches],
        axis=1,
    )
    max_err = float(jnp.max(jnp.abs(out - ref)))
    assert jnp.allclose(out, ref, atol=1e-3, rtol=1e-3), max_err

    print("KERNEL_OK")
</pallas_src>

<mosaic_0001>
module attributes {stable_mosaic.version = 11 : i64} {
  func.func @patch_embed_kernel(%arg0: i32, %arg1: i32, %arg2: i32, %arg3: memref<1x16x128xbf16, #tpu.memory_space<vmem>>, %arg4: memref<128x128xbf16, #tpu.memory_space<vmem>>, %arg5: memref<16x128xbf16, #tpu.memory_space<vmem>>, %arg6: memref<1x16x128xf32, #tpu.memory_space<vmem>>) attributes {dimension_semantics = [#tpu.dimension_semantics<parallel>, #tpu.dimension_semantics<parallel>, #tpu.dimension_semantics<parallel>], iteration_bounds = array<i64: 1, 1, 2>, scalar_prefetch = 0 : i64, scratch_operands = 0 : i64, tpu.core_type = #tpu.core_type<tc>, window_params = [{transform_indices = @transform_0, window_bounds = array<i64: 1, 16, 128>}, {transform_indices = @transform_1, window_bounds = array<i64: 128, 128>}, {transform_indices = @transform_2, window_bounds = array<i64: 16, 128>}, {transform_indices = @transform_3, window_bounds = array<i64: 1, 16, 128>}]} {
    %c0 = arith.constant 0 : index
    %c0_0 = arith.constant 0 : index
    %c0_1 = arith.constant 0 : index
    %0 = vector.load %arg3[%c0, %c0_0, %c0_1] : memref<1x16x128xbf16, #tpu.memory_space<vmem>>, vector<1x16x128xbf16>
    %1 = vector.shape_cast %0 : vector<1x16x128xbf16> to vector<16x128xbf16>
    %c0_2 = arith.constant 0 : index
    %c0_3 = arith.constant 0 : index
    %2 = vector.load %arg4[%c0_2, %c0_3] : memref<128x128xbf16, #tpu.memory_space<vmem>>, vector<128x128xbf16>
    %cst = arith.constant dense<0.000000e+00> : vector<16x128xf32>
    %3 = tpu.matmul %1, %2, %cst {dimension_numbers = #tpu.dot_dimension_numbers<[1], [0], [0], [1], [0, 0, 1, 1], [], []>} : vector<16x128xbf16>, vector<128x128xbf16>, vector<16x128xf32> -> vector<16x128xf32>
    %c0_4 = arith.constant 0 : index
    %c0_5 = arith.constant 0 : index
    %4 = vector.load %arg5[%c0_4, %c0_5] : memref<16x128xbf16, #tpu.memory_space<vmem>>, vector<16x128xbf16>
    %5 = arith.extf %4 : vector<16x128xbf16> to vector<16x128xf32>
    %6 = arith.addf %3, %5 : vector<16x128xf32>
    %c0_6 = arith.constant 0 : index
    %c0_7 = arith.constant 0 : index
    %c0_8 = arith.constant 0 : index
    %7 = vector.load %arg6[%c0_6, %c0_7, %c0_8] : memref<1x16x128xf32, #tpu.memory_space<vmem>>, vector<1x16x128xf32>
    %8 = vector.shape_cast %7 : vector<1x16x128xf32> to vector<16x128xf32>
    %9 = vector.shape_cast %6 : vector<16x128xf32> to vector<1x16x128xf32>
    tpu.vector_store %arg6[%c0_6, %c0_7, %c0_8], %9 {strides = array<i32>} : memref<1x16x128xf32, #tpu.memory_space<vmem>>, vector<1x16x128xf32>,
    return
  }
  func.func @transform_0(%arg0: i32, %arg1: i32, %arg2: i32) -> (i32, i32, i32) {
    %c0_i32 = arith.constant 0 : i32
    %c0_i32_0 = arith.constant 0 : i32
    return %arg2, %arg1, %c0_i32 : i32, i32, i32
  }
  func.func @transform_1(%arg0: i32, %arg1: i32, %arg2: i32) -> (i32, i32) {
    %c0_i32 = arith.constant 0 : i32
    %c0_i32_0 = arith.constant 0 : i32
    return %c0_i32, %arg0 : i32, i32
  }
  func.func @transform_2(%arg0: i32, %arg1: i32, %arg2: i32) -> (i32, i32) {
    %c0_i32 = arith.constant 0 : i32
    return %arg1, %arg0 : i32, i32
  }
  func.func @transform_3(%arg0: i32, %arg1: i32, %arg2: i32) -> (i32, i32, i32) {
    %c0_i32 = arith.constant 0 : i32
    return %arg2, %arg1, %arg0 : i32, i32, i32
  }
}

</mosaic_0001>

<bundles_post_ra>
// kernel: tpu_custom_call.1
= control target key start
LH: loop header
LB: loop body
LE: loop exit
PB: predicated region body
PF: predicated region fallthrough
CT: control target
= control target key end

     0   :  { %8 = vsyncpa [#allocation3], 0  ;;  %s1152_s0 = inlined_call_operand.hbm [shape: bf16[2,16,128], index: 0, kind: input, shape index: {}]   ;;  %s1153_s1 = inlined_call_operand.hbm [shape: bf16[128,128], index: 1, kind: input, shape index: {}]   ;;  %s1154_s2 = inlined_call_operand.hbm [shape: bf16[16,128], index: 2, kind: input, shape index: {}]   ;;  %s1155_s3 = inlined_call_operand.hbm [shape: f32[2,16,128], index: 3, kind: output, shape index: {}]  }
   0x1   :  { %10 = vsyncpa [#allocation3 + $0x1], 0 }
   0x2   :  { %11 = vsyncpa [#allocation6], 0 }
   0x3   :  { %12 = vsyncpa [#allocation4], 0 }
   0x4   :  { %14 = vsyncpa [#allocation4 + $0x1], 0  ;;  %s884_s12 = smov 0   ;;  %s886_s13 = smov 0  }
   0x5   :  { %s888_s14 = smov 0   ;;  %s890_s15 = smov 0  }
   0x6   :  { %s892_s16 = smov 0   ;;  %s894_s17 = smov 0  }
   0x7 LB: > { %s519_s18 = sadd.s32 4294967295, %s852_s17   ;;  %s520_s19 = sadd.s32 4294967294, %s852_s17   ;;  %s852_s17 = sphi %s894_s17, %s20_s17   ;;  %s848_s16 = sphi %s892_s16, %s1177_s16   ;;  %s844_s15 = sphi %s890_s15, %s1176_s15   ;;  %s840_s14 = sphi %s888_s14, %s1175_s14   ;;  %s836_s13 = sphi %s886_s13, %s1174_s13   ;;  %s832_s12 = sphi %s884_s12, %s1173_s12  }
   0x8   : > { %p61_p0 = scmp.ne.s32.totalorder %s836_s13, %s832_s12  ;;  %p918_p1 = scmp.eq.s32.totalorder %s519_s18, 0 }
   0x9   : > { %p922_p2 = scmp.eq.s32.totalorder %s519_s18, 1  ;;  %p149_p3 = scmp.eq.s32.totalorder %s520_s19, 1 }
   0xa   : > { %s1160_s20 = scalar_select %p918_p1, 1, 0 }
   0xb   : > { %p928_p4 = por %p918_p1, %p61_p0  ;;  %p521_p5 = scmp.ge.s32.totalorder %s852_s17, 1 }
   0xc   : > { %p933_p6 = por %p149_p3, %p61_p0  ;;  %p156_p7 = scmp.lt.s32.totalorder %s852_s17, 3 }
   0xd   : > { %s1162_s22 = scalar_select %p928_p4, 1, 0 }
   0xe   : > { %s1163_s23 = scalar_select %p933_p6, 1, 0 }
   0xf   : > { %p938_p8 = pnand %p521_p5, %p156_p7  ;;  %s854_s25 = smov [#allocation5]  }
  0x10   : > { %s170_s26 = sshll.u32 %s854_s25, 4  ;;  %s855_s28 = smov [#allocation7]   ;;  %s942_s26 = int_to_ptr.vmem [resolvable:$true] %s170_s26 }
  0x11   : > { %p594_p9 = pneg %p938_p8  ;;  %s187_s29 = sshll.u32 %s855_s28, 4  ;;  %s953_s29 = int_to_ptr.vmem [resolvable:$true] %s187_s29 }
  0x12   : > { %s680_s5 = scalar_lea.hbm %s1153_s1, 1024 }
  0x13   : > { %p949_p11 = pnand %p594_p9, %p918_p1  ;;  %p681_p12 = scmp.ne.s32.totalorder %s1153_s1, %s680_s5 }
  0x14   : > { %p687_p5 = scmp.lt.u32.totalorder %s680_s5, %s1153_s1 }
  0x15   : > { %p682_p13 = pneg %p949_p11 }
  0x17   : > { %p683_p0 = pnand %p682_p13, %p681_p12 }
  0x19   : > { %p684_p3 = pneg %p683_p0 }
  0x1b   : > { %p689_p7 = pnand %p687_p5, %p684_p3 }
  0x1d   : > { %692 = shalt.err (!%p689_p7)
}
  0x1e   : > { %s693_s10 = scalar_lea.vmem %s942_s26, 1024  ;;  %p701_p1 = scmp.lt.s32.totalorder %s942_s26, %s942_s26 }
  0x1f   : > { %p694_p9 = scmp.ne.s32.totalorder %s942_s26, %s693_s10  ;;  %p702_p12 = scmp.lt.s32.totalorder %s693_s10, %s693_s10 }
  0x21   : > { %p696_p10 = pnand %p694_p9, %p682_p13  ;;  %p703_p0 = por %p702_p12, %p701_p1 }
  0x23   : > { %p697_p6 = pneg %p696_p10 }
  0x25   : > { %p704_p4 = pnand %p703_p0, %p697_p6 }
  0x27   : > { %707 = shalt.err (!%p704_p4)
}
  0x28   : > { %s856_s11 = smov 64   ;;  %s857_s18 = smov 4  }
  0x29   : > { %597 = dma.hbm_to_vmem [thread:$0]  (!%p949_p11), %s1153_s1, 1024, %s942_s26, [#allocation6], %s856_s11, %s856_s11, %s857_s18  }
  0x2a   : > { %s708_s4 = scalar_lea.hbm %s1154_s2, 128 }
  0x2b   : > { %p709_p1 = scmp.ne.s32.totalorder %s1154_s2, %s708_s4  ;;  %p715_p10 = scmp.lt.u32.totalorder %s708_s4, %s1154_s2 }
  0x2d   : > { %p711_p4 = pnand %p709_p1, %p682_p13 }
  0x2f   : > { %p712_p6 = pneg %p711_p4 }
  0x31   : > { %p717_p3 = pnand %p715_p10, %p712_p6 }
  0x33   : > { %720 = shalt.err (!%p717_p3)
}
  0x34   : > { %s721_s26 = scalar_lea.vmem %s953_s29, 128  ;;  %p729_p12 = scmp.lt.s32.totalorder %s953_s29, %s953_s29 }
  0x35   : > { %p722_p5 = scmp.ne.s32.totalorder %s953_s29, %s721_s26  ;;  %p730_p0 = scmp.lt.s32.totalorder %s721_s26, %s721_s26 }
  0x37   : > { %p724_p7 = pnand %p722_p5, %p682_p13  ;;  %p731_p1 = por %p730_p0, %p729_p12 }
  0x39   : > { %p725_p9 = pneg %p724_p7 }
  0x3b   : > { %p732_p4 = pnand %p731_p1, %p725_p9 }
  0x3d   : > { %735 = shalt.err (!%p732_p4)
}
  0x3e   : > { %600 = dma.hbm_to_vmem [thread:$0]  (!%p949_p11), %s1154_s2, 128, %s953_s29, [#allocation6], %s856_s11, %s856_s11, %s857_s18  }
  0x3f   : > { %s32_s27 = sadd.s32 1, %s848_s16  ;;  %s48_s19 = sadd.s32 1, %s840_s14 }
  0x40   : > { %p33_p13 = scmp.ge.s32.totalorder %s32_s27, 2  ;;  %p55_p6 = scmp.ne.s32.totalorder %s840_s14, %s836_s13 }
  0x41   : > { %p56_p10 = scmp.eq.s32.totalorder %s852_s17, 0  ;;  %p611_p3 = scmp.lt.s32.totalorder %s852_s17, 2 }
  0x42   : > { %s1179_s27 = smov (%p33_p13, %s32_s27), 0  ;;  %p1023_p7 = por %p922_p2, %p55_p6 }
  0x43   : > { %p57_p5 = por %p56_p10, %p55_p6  ;;  %s43_s28 = ssub.s32 %s848_s16, %s1179_s27 }
  0x44   : > { %s1166_s25 = scalar_select %p1023_p7, 1, 0 }
  0x45   : > { %s201_s30 = sand.u32 1, %s840_s14   ;;  %p46_p9 = scmp.eq.s32.totalorder %s43_s28, 0 }
  0x46   : > { %s525_s29 = sshll.u32 %s201_s30, 3  ;;  %s547_s4 = sshll.u32 %s848_s16, 7 }
  0x47   : > { %s1032_s5 = scalar_select %p46_p9, %s840_s14, %s48_s19  }
  0x48   : > { %s1037_s8 = scalar_lea.hbm %s1152_s0, %s547_s4  ;;  %s205_s21 = scalar_lea.vmem [#allocation2], %s525_s29 }
  0x49   : > { %s214_s26 = sshll.u32 %s205_s21, 4  ;;  %p1041_p2 = pnand %p611_p3, %p57_p5  ;;  %s1045_s26 = int_to_ptr.vmem [resolvable:$true] %s214_s26 }
  0x4a   : > { %s1047_s10 = scalar_lea.sflag [#allocation3], %s201_s30  ;;  %s736_s19 = scalar_lea.hbm %s1037_s8, 128 }
  0x4b   : > { %p737_p11 = scmp.ne.s32.totalorder %s1037_s8, %s736_s19  ;;  %p738_p12 = pneg %p1041_p2 }
  0x4c   : > { %s741_s4 = scalar_lea.hbm %s1152_s0, 256  ;;  %p742_p4 = scmp.lt.u32.totalorder %s1037_s8, %s1152_s0 }
  0x4d   : > { %p739_p0 = pnand %p738_p12, %p737_p11  ;;  %p743_p13 = scmp.lt.u32.totalorder %s741_s4, %s736_s19 }
  0x4e   : > { %p745_p10 = scmp.lt.u32.totalorder %s736_s19, %s1037_s8 }
  0x4f   : > { %p740_p1 = pneg %p739_p0  ;;  %p744_p6 = por %p743_p13, %p742_p4 }
  0x51   : > { %p746_p3 = por %p745_p10, %p744_p6 }
  0x53   : > { %p747_p5 = pnand %p746_p3, %p740_p1 }
  0x55   : > { %750 = shalt.err (!%p747_p5)
}
  0x56   : > { %s751_s30 = scalar_lea.vmem %s1045_s26, 128  ;;  %s858_s21 = smov [#allocation2]  }
  0x57   : > { %p752_p9 = scmp.ne.s32.totalorder %s1045_s26, %s751_s30  ;;  %s756_s28 = sshll.u32 %s858_s21, 4  ;;  %s757_s28 = int_to_ptr.vmem [resolvable:$false] %s756_s28 }
  0x58   : > { %s758_s29 = scalar_lea.vmem %s757_s28, 256  ;;  %p759_p7 = scmp.lt.s32.totalorder %s1045_s26, %s757_s28 }
  0x59   : > { %p754_p11 = pnand %p752_p9, %p738_p12  ;;  %p760_p4 = scmp.lt.s32.totalorder %s758_s29, %s751_s30 }
  0x5b   : > { %p755_p0 = pneg %p754_p11  ;;  %p761_p13 = por %p760_p4, %p759_p7 }
  0x5d   : > { %p762_p6 = pnand %p761_p13, %p755_p0 }
  0x5f   : > { %765 = shalt.err (!%p762_p6)
}
  0x60   : > { %604 = dma.hbm_to_vmem [thread:$0]  (!%p1041_p2), %s1037_s8, 128, %s1045_s26, %s1047_s10, %s856_s11, %s856_s11, %s857_s18  }
  0x61   : > { %226 = sbr.rel (%p938_p8) target bundleno = 372 (0x174), region = 32  ;;  %s1081_s19 = sand.u32 (!%p938_p8), 1, %s836_s13  }
  0x62   : > { %s529_s4 = sshll.u32 (!%p938_p8), %s1081_s19, 3  ;;  %s229_s6 = scalar_lea.sflag (!%p938_p8), [#allocation3], %s1081_s19 }
  0x63   : > { %s1085_s7 = scalar_lea.vmem (!%p938_p8), [#allocation2], %s529_s4  ;;  %p1168_p7 = scmp.ne.s32.totalorder (!%p938_p8), %s1162_s22, 0 }
  0x68   : > { %819 = dma.done.wait (%p1168_p7), %s229_s6, 128  }
  0x69   : > { %821 = vsyncadd (%p1168_p7), %s229_s6, 4294967168  ;;  %p1169_p2 = scmp.ne.s32.totalorder %s1160_s20, 0 }
  0x6b   : > { %823 = dma.done.wait (%p1169_p2), [#allocation6], 1152  }
  0x6c   : > { %825 = vsyncadd (%p1169_p2), [#allocation6], 4294966144  ;;  %v859_v0 = vmov 0.0   ;;  %vm860_vm0 = vmmov 0   ;;  %v671_v1 = vld [vmem:[#allocation5] sm:$0xff]   ;;  %v672_v2 = vld [vmem:[#allocation5 + $0x8] sm:$0xff]  }
  0x6d   : > { %562 = vmatprep.subr.bf16.mxu0 %v859_v0  ;;  %578 = vmatprep.mubr.msk.bf16.mxu0 %vm860_vm0, %v859_v0  ;;  %v673_v3 = vld [vmem:[#allocation5 + $0x10] sm:$0xff]   ;;  %v674_v4 = vld [vmem:[#allocation5 + $0x18] sm:$0xff]   ;;  %v675_v5 = vld [vmem:[#allocation5 + $0x20] sm:$0xff]   ;;  %s532_s20 = sshll.u32 %s1081_s19, 4  ;;  %s548_s11 = sshll.u32 %s844_s15, 8 }
  0x6e   : > { %563 = vmatpush3.bf16.msra.mxu0 %v671_v1  ;;  %v676_v6 = vld [vmem:[#allocation5 + $0x28] sm:$0xff]   ;;  %v677_v7 = vld [vmem:[#allocation5 + $0x30] sm:$0xff]   ;;  %v678_v8 = vld [vmem:[#allocation5 + $0x38] sm:$0xff]   ;;  %s262_s22 = scalar_lea.vmem [#allocation8], %s532_s20  ;;  %s1103_s26 = scalar_lea.hbm %s1155_s3, %s548_s11 }
  0x6f   : > { %564 = vmatprep.subr.bf16.mxu0 %v859_v0  ;;  %v679_v9 = vld [vmem:[%s1085_s7] sm:$0xff]   ;;  %v550_v10 = vld [vmem:[#allocation7] sm:$0xff]   ;;  %s403_s24 = sshll.u32 %s262_s22, 4  ;;  %s387_s9 = scalar_lea.sflag [#allocation4], %s1081_s19  ;;  %s1098_s24 = int_to_ptr.vmem [resolvable:$true] %s403_s24 }
  0x70   : > { %v551_v11 = vunpack.c.l.bf16 %v550_v10  ;;  %v552_v12 = vunpack.c.h.bf16 %v550_v10  ;;  %s766_s15 = scalar_lea.vmem %s1098_s24, 256  ;;  %p1170_p12 = scmp.ne.s32.totalorder %s1166_s25, 0 }
  0x71   : > { %p767_p8 = scmp.ne.s32.totalorder %s1098_s24, %s766_s15  ;;  %s861_s10 = smov [#allocation8]  }
  0x72   : > { %565 = vmatpush3.bf16.msra.mxu0 %v672_v2  ;;  %s770_s30 = sshll.u32 %s861_s10, 4  ;;  %s771_s30 = int_to_ptr.vmem [resolvable:$false] %s770_s30 }
  0x73   : > { %566 = vmatprep.subr.bf16.mxu0 %v859_v0  ;;  %p768_p1 = pnand %p767_p8, %p1170_p12  ;;  %s772_s21 = scalar_lea.vmem %s771_s30, 512 }
  0x74   : > { %p773_p3 = scmp.lt.s32.totalorder %s1098_s24, %s771_s30  ;;  %p774_p5 = scmp.lt.s32.totalorder %s772_s21, %s766_s15 }
  0x75   : > { %p769_p10 = pneg %p768_p1 }
  0x76   : > { %567 = vmatpush3.bf16.msra.mxu0 %v673_v3  ;;  %p775_p9 = por %p774_p5, %p773_p3 }
  0x77   : > { %568 = vmatprep.subr.bf16.mxu0 %v859_v0 }
  0x78   : > { %p776_p11 = pnand %p775_p9, %p769_p10 }
  0x7a   : > { %569 = vmatpush3.bf16.msra.mxu0 %v674_v4 }
  0x7b   : > { %570 = vmatprep.subr.bf16.mxu0 %v859_v0 }
  0x7e   : > { %571 = vmatpush3.bf16.msra.mxu0 %v675_v5 }
  0x7f   : > { %572 = vmatprep.subr.bf16.mxu0 %v859_v0 }
  0x82   : > { %573 = vmatpush3.bf16.msra.mxu0 %v676_v6 }
  0x83   : > { %574 = vmatprep.subr.bf16.mxu0 %v859_v0 }
  0x86   : > { %575 = vmatpush3.bf16.msra.mxu0 %v677_v7 }
  0x87   : > { %576 = vmatprep.subr.bf16.mxu0 %v859_v0 }
  0x8a   : > { %577 = vmatpush3.bf16.msra.mxu0 %v678_v8 }
  0x8d   : > { %579 = vmatmul.mubr.bf16.vlgmr.msra.gmra.mrb[0].mxu0 %v679_v9 }
 0x160   : > { %v377_v13 = vpop.f32.mrb[0].mxu0 }
 0x161   : > { %v378_v14 = vadd.f32 %v551_v11, %v377_v13  ;;  %v580_v15 = vpop.f32.mrb[1].mxu0 }
 0x162   : > { %v380_v16 = vpop.f32.mrb[2].mxu0 }
 0x163   : > { %384 = vst [vmem:[%s262_s22] sm:$0xff] %v378_v14  ;;  %v381_v17 = vadd.f32 %v552_v12, %v380_v16  ;;  %v581_v18 = vpop.f32.mrb[3].mxu0 }
 0x165   : > { %385 = vst [vmem:[%s262_s22 + $0x8] sm:$0xff] %v381_v17 }
 0x166   : > { %779 = shalt.err (!%p776_p11)
}
 0x167   : > { %s780_s28 = scalar_lea.hbm %s1103_s26, 256  ;;  %s784_s6 = scalar_lea.hbm %s1155_s3, 512 }
 0x168   : > { %p781_p0 = scmp.ne.s32.totalorder %s1103_s26, %s780_s28  ;;  %p785_p6 = scmp.lt.u32.totalorder %s1103_s26, %s1155_s3 }
 0x169   : > { %p786_p7 = scmp.lt.u32.totalorder %s784_s6, %s780_s28  ;;  %p788_p8 = scmp.lt.u32.totalorder %s780_s28, %s1103_s26 }
 0x16a   : > { %p782_p4 = pnand %p781_p0, %p1170_p12 }
 0x16b   : > { %p787_p2 = por %p786_p7, %p785_p6 }
 0x16c   : > { %p783_p13 = pneg %p782_p4 }
 0x16d   : > { %p789_p1 = por %p788_p8, %p787_p2 }
 0x16f   : > { %p790_p10 = pnand %p789_p1, %p783_p13 }
 0x171   : > { %793 = shalt.err (!%p790_p10)
}
 0x172   : > { %s862_s22 = smov 128   ;;  %s863_s11 = smov 8  }
 0x173   : > { %592 = dma.vmem_to_hbm [thread:$0]  (%p1170_p12), %s1098_s24, 256, %s1103_s26, %s387_s9, %s862_s22, %s862_s22, %s863_s11  }
 0x174 PF: > { %s418_s18 = sand.u32 1, %s832_s12   ;;  %p1171_p3 = scmp.ne.s32.totalorder %s1163_s23, 0 }
 0x175   : > { %p1172_p5 = scmp.ge.s32.totalorder %s852_s17, 2  ;;  %s419_s8 = scalar_lea.sflag [#allocation4], %s418_s18 }
 0x177   : > { %p606_p9 = pnand %p1172_p5, %p1171_p3 }
 0x179   : > { %827 = dma.done.wait (!%p606_p9), %s419_s8, 256  }
 0x17a   : > { %829 = vsyncadd (!%p606_p9), %s419_s8, 4294967040  ;;  %s20_s17 = sadd.s32 1, %s852_s17   ;;  %s1173_s12 = smov %s836_s13 }
 0x17b   : > { %p17_p11 = scmp.ge.s32.totalorder %s20_s17, 4   ;;  %s1174_s13 = smov %s840_s14 }
 0x17c   : > { %s1175_s14 = smov %s1032_s5  ;;  %s1176_s15 = smov %s848_s16 }
 0x17d   : > { %s1177_s16 = smov %s1179_s27  ;;  %19 = sbr.rel (!%p17_p11) target bundleno = 7 (0x7), region = 87 }
 0x184   :  { %424 = vsyncpa [#allocation3], 1 }
 0x185   :  { %426 = vsyncpa [#allocation3 + $0x1], 1 }
 0x186   :  { %427 = vsyncpa [#allocation6], 1 }
 0x187   :  { %428 = vsyncpa [#allocation4], 1 }
 0x188   :  { %430 = vsyncpa [#allocation4 + $0x1], 1 }

</bundles_post_ra>
